<compile_context>
chip_gen: v6e
topology: v6e:2x2x1
jax: 0.10.0
libtpu: 0.0.40
codegen_flags: <defaults>
</compile_context>

<pallas_src>
import functools

import jax
import jax.numpy as jnp
from jax import lax
from jax.experimental import pallas as pl
from jax.experimental.pallas import tpu as pltpu

TAU = 0.2


def _mlp_kernel(*refs, H, V, add_noise):
    if add_noise:
        (z_ref, g_ref, w1_ref, w2_ref, w3_ref, b_ref, embT_ref,
         xT_ref, eT_ref) = refs
    else:
        (z_ref, w1_ref, w2_ref, w3_ref, b_ref, embT_ref,
         xT_ref, eT_ref) = refs
        g_ref = None

    # z tile arrives in natural (TB, D) layout; contract on D so activations
    # live batch-on-lanes from the first layer:  h1 = W1 @ z^T  ->  (H, TB).
    dn = (((1,), (1,)), ((), ()))
    h1 = lax.dot_general(w1_ref[...], z_ref[...], dn,
                         preferred_element_type=jnp.float32)
    h1 = jnp.maximum(h1 + b_ref[0:H, :], 0.0)

    # Linear(H, H) + ReLU
    h2 = jnp.dot(w2_ref[...], h1, preferred_element_type=jnp.float32)
    h2 = jnp.maximum(h2 + b_ref[H:2 * H, :], 0.0)

    # Linear(H, V).  W3/b3 are pre-scaled by 1/tau, so lg == logits / tau.
    # LogSoftmax omitted: softmax((log_softmax(l)+g)/tau) == softmax((l+g)/tau)
    # (row-wise shift invariance), and logp is never returned by the module.
    lg = (jnp.dot(w3_ref[...], h2, preferred_element_type=jnp.float32)
          + b_ref[2 * H:2 * H + V, :])                              # (V, TB)

    y = lg + g_ref[...] if add_noise else lg                        # gumbel/tau

    # Exact softmax over the vocab axis (axis 0 in batch-on-lanes layout).
    ym = jnp.max(y, axis=0, keepdims=True)
    ey = jnp.exp(y - ym)
    x = ey / jnp.sum(ey, axis=0, keepdims=True)                     # (V, TB)

    xT_ref[...] = x
    # e^T = emb^T @ x  ->  (E, TB), lane-dense store.
    eT_ref[...] = jnp.dot(embT_ref[...], x, preferred_element_type=jnp.float32)


def mlp_forward(h, c, z, params, key, *, tb=None, add_noise=True):
    """'train'-mode forward pass. Returns (x, e) with shapes (B, V), (B, E).

    If `tb` is given it must be a multiple of 128 (lane-dense output stores).
    """
    w1, b1, w2, b2, w3, b3, emb = params     # torch layout: w (out, in), b (out,)
    B = h.shape[0]
    if z is None:
        key, zk = jax.random.split(key)
        z = jax.random.normal(zk, (B, 2), dtype=jnp.float32)

    zcat = jnp.concatenate((h, c, z), axis=1).astype(jnp.float32)   # (B, D)
    D = zcat.shape[1]
    H = w1.shape[0]
    V = w3.shape[0]
    E = emb.shape[1]

    # Tile choice: 1 step when the batch fits one 128-lane tile, else 2
    # balanced "parallel" steps (feeds both v7x TensorCores; only ~0.7 us of
    # step overhead total, fine on single-TC v5e/v6e as well).
    if tb is None:
        n_tiles = 1 if B <= 128 else 2
        tb = pl.cdiv(pl.cdiv(B, n_tiles), 128) * 128
    else:
        n_tiles = pl.cdiv(B, tb)
    Bp = n_tiles * tb

    if Bp != B:
        zcat = jnp.pad(zcat, ((0, Bp - B), (0, 0)))

    inv_tau = jnp.float32(1.0 / TAU)
    # Fuse the three bias vectors into a single pinned (2H+V, 1) block
    # (one DMA / one VMEM allocation instead of three narrow ones) and fold
    # the 1/tau scale of the last layer into the parameters.
    b_all = jnp.concatenate((b1, b2, b3 * inv_tau)).reshape(2 * H + V, 1)
    w3s = w3 * inv_tau
    embT = emb.T                                                    # (E, V)

    pinned = lambda shape: pl.BlockSpec(shape, lambda i: (0, 0))

    inputs = [zcat]
    in_specs = [pl.BlockSpec((tb, D), lambda i: (i, 0))]            # z tile
    if add_noise:
        # Gumbel(0,1)/tau noise, drawn straight in the (V, Bp) lane layout.
        g = jax.random.gumbel(key, (V, Bp), dtype=jnp.float32) * inv_tau
        inputs.append(g)
        in_specs.append(pl.BlockSpec((V, tb), lambda i: (0, i)))
    inputs += [w1, w2, w3s, b_all, embT]
    in_specs += [pinned((H, D)), pinned((H, H)), pinned((V, H)),
                 pinned((2 * H + V, 1)), pinned((E, V))]

    xT, eT = pl.pallas_call(
        functools.partial(_mlp_kernel, H=H, V=V, add_noise=add_noise),
        out_shape=(jax.ShapeDtypeStruct((V, Bp), jnp.float32),
                   jax.ShapeDtypeStruct((E, Bp), jnp.float32)),
        grid=(n_tiles,),
        in_specs=in_specs,
        out_specs=(pl.BlockSpec((V, tb), lambda i: (0, i)),   # x^T (lane-dense)
                   pl.BlockSpec((E, tb), lambda i: (0, i))),  # e^T (lane-dense)
        compiler_params=pltpu.CompilerParams(
            dimension_semantics=("parallel",)),
    )(*inputs)

    # Module semantics are batch-major; consumers that can take the lane-dense
    # (V, B)/(E, B) layout should use xT/eT directly and skip these transposes.
    return xT[:, :B].T, eT[:, :B].T


def init_params(key, D, H, V, E):
    """Deterministic init mirroring nn.Linear / nn.Embedding defaults (torch layout)."""
    ks = jax.random.split(key, 7)

    def linear(kw, kb, fan_in, fan_out):
        bound = 1.0 / jnp.sqrt(jnp.float32(fan_in))
        w = jax.random.uniform(kw, (fan_out, fan_in), jnp.float32, -bound, bound)
        b = jax.random.uniform(kb, (fan_out,), jnp.float32, -bound, bound)
        return w, b

    w1, b1 = linear(ks[0], ks[1], D, H)
    w2, b2 = linear(ks[2], ks[3], H, H)
    w3, b3 = linear(ks[4], ks[5], H, V)
    emb = jax.random.normal(ks[6], (V, E), jnp.float32)
    emb = emb.at[0].set(0.0)  # padding_idx=0
    return (w1, b1, w2, b2, w3, b3, emb)


def _ref_forward_nonoise(zcat, params, tau=TAU):
    """Pure-JAX reference of the module with zero Gumbel noise."""
    w1, b1, w2, b2, w3, b3, emb = params
    h1 = jnp.maximum(zcat @ w1.T + b1, 0.0)
    h2 = jnp.maximum(h1 @ w2.T + b2, 0.0)
    lg = h2 @ w3.T + b3
    logp = jax.nn.log_softmax(lg, axis=-1)
    x = jax.nn.softmax(logp / tau, axis=-1)
    return x, x @ emb


if __name__ == "__main__":
    # D = dim(h) + dim(c) + 2; feature dims match the toy module.
    B, DH, DC = 512, 16, 14
    D = DH + DC + 2          # 32
    H = 32
    VOCAB = 16
    EMBED = 8

    root = jax.random.PRNGKey(0)
    kp, kh, kc, kz, kg = jax.random.split(root, 5)

    params = init_params(kp, D, H, VOCAB, EMBED)
    h = jax.random.normal(kh, (B, DH), jnp.float32)
    c = jax.random.normal(kc, (B, DC), jnp.float32)
    z = jax.random.normal(kz, (B, 2), jnp.float32)

    # 1) Validate the deterministic pipeline (noise disabled) against pure JAX.
    x0, e0 = mlp_forward(h, c, z, params, kg, add_noise=False)
    jax.block_until_ready((x0, e0))
    zcat = jnp.concatenate((h, c, z), axis=1)
    xr, er = _ref_forward_nonoise(zcat, params)
    assert jnp.allclose(x0, xr, atol=1e-3), "noise-free x mismatch vs reference"
    assert jnp.allclose(e0, er, atol=1e-3), "noise-free e mismatch vs reference"

    # 2) Real train-mode path with Gumbel noise.
    x, e = mlp_forward(h, c, z, params, kg, add_noise=True)
    jax.block_until_ready((x, e))

    assert x.shape == (B, VOCAB) and e.shape == (B, EMBED)
    assert bool(jnp.all(x >= 0.0))
    # x is an (exact-divide) softmax output: rows sum to 1.
    assert jnp.allclose(jnp.sum(x, axis=-1), 1.0, atol=1e-5)
    # e must be the embedding mix of the returned x.
    assert jnp.allclose(e, x @ params[6], atol=1e-4)

    print("KERNEL_OK")
</pallas_src>

<mosaic_0001>
module attributes {stable_mosaic.version = 11 : i64} {
  func.func @_mlp_kernel(%arg0: i32, %arg1: memref<256x32xf32, #tpu.memory_space<vmem>>, %arg2: memref<32x32xf32, #tpu.memory_space<vmem>>, %arg3: memref<32x32xf32, #tpu.memory_space<vmem>>, %arg4: memref<16x32xf32, #tpu.memory_space<vmem>>, %arg5: memref<80x1xf32, #tpu.memory_space<vmem>>, %arg6: memref<8x16xf32, #tpu.memory_space<vmem>>, %arg7: memref<16x256xf32, #tpu.memory_space<vmem>>, %arg8: memref<8x256xf32, #tpu.memory_space<vmem>>) attributes {dimension_semantics = [#tpu.dimension_semantics<parallel>], iteration_bounds = array<i64: 2>, scalar_prefetch = 0 : i64, scratch_operands = 0 : i64, tpu.core_type = #tpu.core_type<tc>, window_params = [{transform_indices = @transform_0, window_bounds = array<i64: 256, 32>}, {pipeline_mode = #tpu.pipeline_mode<synchronous>, transform_indices = @transform_1, window_bounds = array<i64: 32, 32>}, {pipeline_mode = #tpu.pipeline_mode<synchronous>, transform_indices = @transform_2, window_bounds = array<i64: 32, 32>}, {pipeline_mode = #tpu.pipeline_mode<synchronous>, transform_indices = @transform_3, window_bounds = array<i64: 16, 32>}, {pipeline_mode = #tpu.pipeline_mode<synchronous>, transform_indices = @transform_4, window_bounds = array<i64: 80, 1>}, {pipeline_mode = #tpu.pipeline_mode<synchronous>, transform_indices = @transform_5, window_bounds = array<i64: 8, 16>}, {transform_indices = @transform_6, window_bounds = array<i64: 16, 256>}, {transform_indices = @transform_7, window_bounds = array<i64: 8, 256>}]} {
    %c0 = arith.constant 0 : index
    %c0_0 = arith.constant 0 : index
    %0 = vector.load %arg2[%c0, %c0_0] : memref<32x32xf32, #tpu.memory_space<vmem>>, vector<32x32xf32>
    %c0_1 = arith.constant 0 : index
    %c0_2 = arith.constant 0 : index
    %1 = vector.load %arg1[%c0_1, %c0_2] : memref<256x32xf32, #tpu.memory_space<vmem>>, vector<256x32xf32>
    %cst = arith.constant dense<0.000000e+00> : vector<32x256xf32>
    %2 = tpu.matmul %0, %1, %cst {dimension_numbers = #tpu.dot_dimension_numbers<[1], [1], [0], [0], [0, 0, 1, 0], [], []>} : vector<32x32xf32>, vector<256x32xf32>, vector<32x256xf32> -> vector<32x256xf32>
    %c0_3 = arith.constant 0 : index
    %c0_4 = arith.constant 0 : index
    %3 = vector.load %arg5[%c0_3, %c0_4] : memref<80x1xf32, #tpu.memory_space<vmem>>, vector<32x1xf32>
    %4 = vector.broadcast %3 : vector<32x1xf32> to vector<32x256xf32>
    %5 = arith.addf %2, %4 : vector<32x256xf32>
    %cst_5 = arith.constant 0.000000e+00 : f32
    %6 = vector.broadcast %cst_5 : f32 to vector<32x256xf32>
    %7 = arith.maximumf %5, %6 : vector<32x256xf32>
    %c0_6 = arith.constant 0 : index
    %c0_7 = arith.constant 0 : index
    %8 = vector.load %arg3[%c0_6, %c0_7] : memref<32x32xf32, #tpu.memory_space<vmem>>, vector<32x32xf32>
    %cst_8 = arith.constant dense<0.000000e+00> : vector<32x256xf32>
    %9 = tpu.matmul %8, %7, %cst_8 {dimension_numbers = #tpu.dot_dimension_numbers<[1], [0], [0], [1], [0, 0, 1, 1], [], []>} : vector<32x32xf32>, vector<32x256xf32>, vector<32x256xf32> -> vector<32x256xf32>
    %c32 = arith.constant 32 : index
    %c0_9 = arith.constant 0 : index
    %10 = vector.load %arg5[%c32, %c0_9] : memref<80x1xf32, #tpu.memory_space<vmem>>, vector<32x1xf32>
    %11 = vector.broadcast %10 : vector<32x1xf32> to vector<32x256xf32>
    %12 = arith.addf %9, %11 : vector<32x256xf32>
    %cst_10 = arith.constant 0.000000e+00 : f32
    %13 = vector.broadcast %cst_10 : f32 to vector<32x256xf32>
    %14 = arith.maximumf %12, %13 : vector<32x256xf32>
    %c0_11 = arith.constant 0 : index
    %c0_12 = arith.constant 0 : index
    %15 = vector.load %arg4[%c0_11, %c0_12] : memref<16x32xf32, #tpu.memory_space<vmem>>, vector<16x32xf32>
    %cst_13 = arith.constant dense<0.000000e+00> : vector<16x256xf32>
    %16 = tpu.matmul %15, %14, %cst_13 {dimension_numbers = #tpu.dot_dimension_numbers<[1], [0], [0], [1], [0, 0, 1, 1], [], []>} : vector<16x32xf32>, vector<32x256xf32>, vector<16x256xf32> -> vector<16x256xf32>
    %c64 = arith.constant 64 : index
    %c0_14 = arith.constant 0 : index
    %17 = vector.load %arg5[%c64, %c0_14] : memref<80x1xf32, #tpu.memory_space<vmem>>, vector<16x1xf32>
    %18 = vector.broadcast %17 : vector<16x1xf32> to vector<16x256xf32>
    %19 = arith.addf %16, %18 : vector<16x256xf32>
    %cst_15 = arith.constant dense<0xFF800000> : vector<256xf32>
    %20 = vector.multi_reduction <maximumf>, %19, %cst_15 [0] : vector<16x256xf32> to vector<256xf32>
    %21 = vector.shape_cast %20 : vector<256xf32> to vector<1x256xf32>
    %22 = vector.broadcast %21 : vector<1x256xf32> to vector<16x256xf32>
    %23 = arith.subf %19, %22 : vector<16x256xf32>
    %24 = math.exp %23 : vector<16x256xf32>
    %cst_16 = arith.constant dense<0.000000e+00> : vector<256xf32>
    %25 = vector.multi_reduction <add>, %24, %cst_16 [0] : vector<16x256xf32> to vector<256xf32>
    %26 = vector.shape_cast %25 : vector<256xf32> to vector<1x256xf32>
    %27 = vector.broadcast %26 : vector<1x256xf32> to vector<16x256xf32>
    %28 = arith.divf %24, %27 : vector<16x256xf32>
    %c0_17 = arith.constant 0 : index
    %c0_18 = arith.constant 0 : index
    %29 = vector.load %arg7[%c0_17, %c0_18] : memref<16x256xf32, #tpu.memory_space<vmem>>, vector<16x256xf32>
    tpu.vector_store %arg7[%c0_17, %c0_18], %28 {strides = array<i32>} : memref<16x256xf32, #tpu.memory_space<vmem>>, vector<16x256xf32>,
    %c0_19 = arith.constant 0 : index
    %c0_20 = arith.constant 0 : index
    %30 = vector.load %arg6[%c0_19, %c0_20] : memref<8x16xf32, #tpu.memory_space<vmem>>, vector<8x16xf32>
    %cst_21 = arith.constant dense<0.000000e+00> : vector<8x256xf32>
    %31 = tpu.matmul %30, %28, %cst_21 {dimension_numbers = #tpu.dot_dimension_numbers<[1], [0], [0], [1], [0, 0, 1, 1], [], []>} : vector<8x16xf32>, vector<16x256xf32>, vector<8x256xf32> -> vector<8x256xf32>
    %c0_22 = arith.constant 0 : index
    %c0_23 = arith.constant 0 : index
    %32 = vector.load %arg8[%c0_22, %c0_23] : memref<8x256xf32, #tpu.memory_space<vmem>>, vector<8x256xf32>
    tpu.vector_store %arg8[%c0_22, %c0_23], %31 {strides = array<i32>} : memref<8x256xf32, #tpu.memory_space<vmem>>, vector<8x256xf32>,
    return
  }
  func.func @transform_0(%arg0: i32) -> (i32, i32) {
    %c0_i32 = arith.constant 0 : i32
    %c0_i32_0 = arith.constant 0 : i32
    return %arg0, %c0_i32 : i32, i32
  }
  func.func @transform_1(%arg0: i32) -> (i32, i32) {
    %c0_i32 = arith.constant 0 : i32
    %c0_i32_0 = arith.constant 0 : i32
    %c0_i32_1 = arith.constant 0 : i32
    return %c0_i32, %c0_i32_0 : i32, i32
  }
  func.func @transform_2(%arg0: i32) -> (i32, i32) {
    %c0_i32 = arith.constant 0 : i32
    %c0_i32_0 = arith.constant 0 : i32
    %c0_i32_1 = arith.constant 0 : i32
    return %c0_i32, %c0_i32_0 : i32, i32
  }
  func.func @transform_3(%arg0: i32) -> (i32, i32) {
    %c0_i32 = arith.constant 0 : i32
    %c0_i32_0 = arith.constant 0 : i32
    %c0_i32_1 = arith.constant 0 : i32
    return %c0_i32, %c0_i32_0 : i32, i32
  }
  func.func @transform_4(%arg0: i32) -> (i32, i32) {
    %c0_i32 = arith.constant 0 : i32
    %c0_i32_0 = arith.constant 0 : i32
    %c0_i32_1 = arith.constant 0 : i32
    return %c0_i32, %c0_i32_0 : i32, i32
  }
  func.func @transform_5(%arg0: i32) -> (i32, i32) {
    %c0_i32 = arith.constant 0 : i32
    %c0_i32_0 = arith.constant 0 : i32
    %c0_i32_1 = arith.constant 0 : i32
    return %c0_i32, %c0_i32_0 : i32, i32
  }
  func.func @transform_6(%arg0: i32) -> (i32, i32) {
    %c0_i32 = arith.constant 0 : i32
    %c0_i32_0 = arith.constant 0 : i32
    return %c0_i32, %arg0 : i32, i32
  }
  func.func @transform_7(%arg0: i32) -> (i32, i32) {
    %c0_i32 = arith.constant 0 : i32
    %c0_i32_0 = arith.constant 0 : i32
    return %c0_i32, %arg0 : i32, i32
  }
}

</mosaic_0001>

<bundles_post_ra>
// kernel: tpu_custom_call.1
= control target key start
LH: loop header
LB: loop body
LE: loop exit
PB: predicated region body
PF: predicated region fallthrough
CT: control target
= control target key end

     0   :  { %s1635_s0 = inlined_call_operand.vmem [shape: f32[512,32], index: 0, kind: input, shape index: {}]   ;;  %s1636_s1 = inlined_call_operand.vmem [shape: f32[32,32], index: 1, kind: input, shape index: {}]   ;;  %s1637_s2 = inlined_call_operand.vmem [shape: f32[32,32], index: 2, kind: input, shape index: {}]   ;;  %s1638_s3 = inlined_call_operand.vmem [shape: f32[16,32], index: 3, kind: input, shape index: {}]   ;;  %s1639_s4 = inlined_call_operand.vmem [shape: f32[80,1], index: 4, kind: input, shape index: {}]   ;;  %s1640_s5 = inlined_call_operand.vmem [shape: f32[8,16], index: 5, kind: input, shape index: {}]   ;;  %s1641_s6 = inlined_call_operand.hbm [shape: f32[16,512], index: 6, kind: output, shape index: {0}]   ;;  %s1642_s7 = inlined_call_operand.hbm [shape: f32[8,512], index: 7, kind: output, shape index: {1}]  }
   0x1   :  { %1643 = sst [smem:[#allocation8_spill]] %s1635_s0 }
   0x2   :  { %1644 = sst [smem:[#allocation9_spill]] %s1636_s1 }
   0x3   :  { %13 = vsyncpa [#allocation3], 0 }
   0x4   :  { %15 = vsyncpa [#allocation3 + $0x1], 0 }
   0x5   :  { %16 = vsyncpa [#allocation5], 0 }
   0x6   :  { %18 = vsyncpa [#allocation5 + $0x1], 0  ;;  %s1350_s24 = smov 0   ;;  %s1352_s25 = smov 0  }
   0x7   :  { %s1354_s26 = smov 0   ;;  %s1356_s27 = smov 0  }
   0x8 LB: > { %s1371_s28 = sadd.s32 4294967295, %s1301_s27   ;;  %s1047_s29 = sadd.s32 4294967294, %s1301_s27   ;;  %s1301_s27 = sphi %s1356_s27, %s1652_s27   ;;  %s1297_s26 = sphi %s1354_s26, %s1651_s26   ;;  %s1293_s25 = sphi %s1352_s25, %s1650_s25   ;;  %s1289_s24 = sphi %s1350_s24, %s1649_s24  }
   0x9   : > { %s1375_s30 = sadd.s32 1, %s1301_s27   ;;  %s162_s8 = sadd.s32 1, %s1297_s26 }
   0xa   : > { %s159_s9 = ssub.s32 %s1301_s27, %s1375_s30  ;;  %p172_p0 = scmp.ne.s32.totalorder %s1297_s26, %s1293_s25 }
   0xb   : > { %p160_p1 = scmp.eq.s32.totalorder %s159_s9, 0  ;;  %p173_p2 = scmp.eq.s32.totalorder %s1371_s28, 1 }
   0xc   : > { %p178_p3 = scmp.ne.s32.totalorder %s1293_s25, %s1289_s24  ;;  %p179_p4 = scmp.eq.s32.totalorder %s1047_s29, 1 }
   0xd   : > { %s1386_s10 = scalar_select %p160_p1, %s1297_s26, %s162_s8  }
   0xe   : > { %p1388_p5 = por %p173_p2, %p172_p0  ;;  %p1392_p6 = por %p179_p4, %p178_p3 }
   0xf   : > { %p1050_p7 = scmp.ge.s32.totalorder %s1301_s27, 1  ;;  %p247_p8 = scmp.lt.s32.totalorder %s1301_s27, 3 }
  0x11   : > { %p248_p9 = pnand %p1050_p7, %p247_p8 }
  0x12   : > { %s1053_s13 = sshll.u32 (!%p248_p9), %s1371_s28, 5  ;;  %s1647_s1 = sld [smem:[#allocation9_spill]] (!%p248_p9) }
  0x13   : > { %251 = sbr.rel (%p248_p9) target bundleno = 1006 (0x3ee), region = 44  ;;  %p285_p10 = scmp.lt.s32.totalorder (!%p248_p9), %s1053_s13, 63 }
  0x14   : > { %s1648_s0 = sld [smem:[#allocation8_spill]] (!%p248_p9)  ;;  %s1106_s22 = sshll.u32 (!%p248_p9), %s1371_s28, 8 }
  0x15   : > { %s1568_s8 = scalar_lea.hbm (!%p248_p9), %s1641_s6, %s1106_s22  ;;  %s1305_s16 = smov (!%p248_p9), [#allocation2]  }
  0x18   : > { %vm352_vm0 = vcmask 261120   ;;  %v1402_v0 = vld [vmem:[%s1647_s1] sm:$0xff]  ;;  %v1303_v1 = vmov 0   ;;  %v331_v2 = vld [vmem:[%s1639_s4 + $0x18] sm:$0xff]  ;;  %v329_v3 = vld [vmem:[%s1639_s4 + $0x8] sm:$0xff]  ;;  %s1654_s13 = smov (!%p285_p10, %s1053_s13), 63 }
  0x19   : > { %1140 = vmatprep.mubr.msk.f32.mxu0 %vm352_vm0, %v1402_v0  ;;  %1198 = vset.pattern.permute.xlu1 %v1303_v1  ;;  %v328_v4 = vld [vmem:[%s1639_s4] sm:$0xff]  ;;  %v330_v5 = vld [vmem:[%s1639_s4 + $0x10] sm:$0xff]  ;;  %s1054_s29 = sshll.u32 %s1654_s13, 3  ;;  %v565_v10 = vld [vmem:[%s1639_s4 + $0x38] sm:$0xff]  ;;  %v1304_v47 = vmov 0.0   ;;  %vm843_vm1 = vcmask 130048  }
  0x1a   : > { %1197 = vset.pattern.permute.xlu0 %v1303_v1  ;;  %339 = vperm.xlu1 %1198, %v329_v3   ;;  %s1421_s14 = scalar_lea.vmem %s1648_s0, %s1054_s29  ;;  %v564_v6 = vld [vmem:[%s1639_s4 + $0x30] sm:$0xff]  ;;  %v562_v13 = vld [vmem:[%s1639_s4 + $0x20] sm:$0xff]  ;;  %v563_v14 = vld [vmem:[%s1639_s4 + $0x28] sm:$0xff]  ;;  %s1215_s13 = sshll.u32 %s1305_s16, 4  ;;  %s1216_s13 = int_to_ptr.vmem [resolvable:$false] %s1215_s13 }
  0x1b   : > { %349 = vperm.xlu0 %1197, %v331_v2   ;;  %v327_v7 = vld [vmem:[%s1421_s14 + $0xf8] sm:$0xff]  ;;  %v326_v9 = vld [vmem:[%s1421_s14 + $0xf0] sm:$0xff]  ;;  %v325_v12 = vld [vmem:[%s1421_s14 + $0xe8] sm:$0xff]  ;;  %662 = vmatprep.mubr.f32.mxu1 %v1304_v47 }
  0x1c   : > { %v311_v8 = vld [vmem:[%s1421_s14 + $0x78] sm:$0xff]  ;;  %1108 = vmatprep.subr.msk.mxu0 %vm352_vm0, %v327_v7  ;;  %v310_v11 = vld [vmem:[%s1421_s14 + $0x70] sm:$0xff]  ;;  %v309_v15 = vld [vmem:[%s1421_s14 + $0x68] sm:$0xff] }
  0x1d   : > { %1109 = vmatpush3.xpose.msk.msra.mxu0 %vm352_vm0, %v311_v8  ;;  %v324_v16 = vld [vmem:[%s1421_s14 + $0xe0] sm:$0xff]  ;;  %v698_v17 = vld [vmem:[%s1639_s4 + $0x48] sm:$0xff]  ;;  %v323_v20 = vld [vmem:[%s1421_s14 + $0xd8] sm:$0xff] }
  0x1e   : > { %334 = vperm.xlu1 %1198, %v328_v4   ;;  %1110 = vmatprep.subr.msk.mxu0 %vm352_vm0, %v326_v9  ;;  %v697_v18 = vld [vmem:[%s1639_s4 + $0x40] sm:$0xff]  ;;  %v307_v21 = vld [vmem:[%s1421_s14 + $0x58] sm:$0xff]  ;;  %v322_v22 = vld [vmem:[%s1421_s14 + $0xd0] sm:$0xff] }
  0x1f   : > { %344 = vperm.xlu0 %1197, %v330_v5   ;;  %v308_v19 = vld [vmem:[%s1421_s14 + $0x60] sm:$0xff]  ;;  %v306_v23 = vld [vmem:[%s1421_s14 + $0x50] sm:$0xff]  ;;  %v321_v24 = vld [vmem:[%s1421_s14 + $0xc8] sm:$0xff] }
  0x20   : > { %v305_v25 = vld [vmem:[%s1421_s14 + $0x48] sm:$0xff]  ;;  %v320_v26 = vld [vmem:[%s1421_s14 + $0xc0] sm:$0xff]  ;;  %v319_v28 = vld [vmem:[%s1421_s14 + $0xb8] sm:$0xff] }
  0x21   : > { %1111 = vmatpush3.xpose.msk.msra.mxu0 %vm352_vm0, %v310_v11  ;;  %v304_v27 = vld [vmem:[%s1421_s14 + $0x40] sm:$0xff]  ;;  %v303_v29 = vld [vmem:[%s1421_s14 + $0x38] sm:$0xff]  ;;  %v318_v30 = vld [vmem:[%s1421_s14 + $0xb0] sm:$0xff] }
  0x22   : > { %578 = vperm.xlu1 %1198, %v564_v6   ;;  %1112 = vmatprep.subr.msk.mxu0 %vm352_vm0, %v325_v12  ;;  %v302_v31 = vld [vmem:[%s1421_s14 + $0x30] sm:$0xff]  ;;  %v317_v32 = vld [vmem:[%s1421_s14 + $0xa8] sm:$0xff]  ;;  %v316_v34 = vld [vmem:[%s1421_s14 + $0xa0] sm:$0xff] }
  0x23   : > { %583 = vperm.xlu0 %1197, %v565_v10   ;;  %v301_v33 = vld [vmem:[%s1421_s14 + $0x28] sm:$0xff]  ;;  %v300_v35 = vld [vmem:[%s1421_s14 + $0x20] sm:$0xff]  ;;  %v315_v36 = vld [vmem:[%s1421_s14 + $0x98] sm:$0xff] }
  0x24   : > { %v299_v37 = vld [vmem:[%s1421_s14 + $0x18] sm:$0xff]  ;;  %v314_v38 = vld [vmem:[%s1421_s14 + $0x90] sm:$0xff]  ;;  %v313_v40 = vld [vmem:[%s1421_s14 + $0x88] sm:$0xff] }
  0x25   : > { %1113 = vmatpush3.xpose.msk.msra.mxu0 %vm352_vm0, %v309_v15  ;;  %v298_v39 = vld [vmem:[%s1421_s14 + $0x10] sm:$0xff]  ;;  %v297_v41 = vld [vmem:[%s1421_s14 + $0x8] sm:$0xff]  ;;  %v312_v42 = vld [vmem:[%s1421_s14 + $0x80] sm:$0xff] }
  0x26   : > { %568 = vperm.xlu1 %1198, %v562_v13   ;;  %1114 = vmatprep.subr.msk.mxu0 %vm352_vm0, %v324_v16  ;;  %v296_v43 = vld [vmem:[%s1421_s14] sm:$0xff]  ;;  %v293_v44 = vld [vmem:[%s1647_s1 + $0x8] sm:$0xff]  ;;  %v294_v45 = vld [vmem:[%s1647_s1 + $0x10] sm:$0xff]  ;;  %s1554_s14 = sand.u32 1, %s1293_s25  }
  0x27   : > { %573 = vperm.xlu0 %1197, %v563_v14   ;;  %v295_v46 = vld [vmem:[%s1647_s1 + $0x18] sm:$0xff]  ;;  %v558_v12 = vld [vmem:[%s1637_s2] sm:$0xff]  ;;  %v559_v13 = vld [vmem:[%s1637_s2 + $0x8] sm:$0xff]  ;;  %s1051_s17 = sshll.u32 %s1554_s14, 5  ;;  %s921_s9 = scalar_lea.sflag [#allocation3], %s1554_s14 }
  0x28   : > { %v560_v14 = vld [vmem:[%s1637_s2 + $0x10] sm:$0xff]  ;;  %v561_v15 = vld [vmem:[%s1637_s2 + $0x18] sm:$0xff]  ;;  %s276_s18 = scalar_lea.vmem [#allocation2], %s1051_s17  ;;  %s1217_s17 = scalar_lea.vmem %s1216_s13, 1024 }
  0x29   : > { %1115 = vmatpush3.xpose.msk.msra.mxu0 %vm352_vm0, %v308_v19  ;;  %s939_s21 = sshll.u32 %s276_s18, 4  ;;  %s1560_s21 = int_to_ptr.vmem [resolvable:$true] %s939_s21 }
  0x2a   : > { %706 = vperm.xlu1 %1198, %v698_v17   ;;  %1116 = vmatprep.subr.msk.mxu0 %vm352_vm0, %v323_v20  ;;  %s1211_s15 = scalar_lea.vmem %s1560_s21, 512  ;;  %p1218_p0 = scmp.lt.s32.totalorder %s1560_s21, %s1216_s13 }
  0x2b   : > { %701 = vperm.xlu0 %1197, %v697_v18   ;;  %p1212_p11 = scmp.ne.s32.totalorder %s1560_s21, %s1211_s15  ;;  %p1219_p1 = scmp.lt.s32.totalorder %s1217_s17, %s1211_s15 }
  0x2d   : > { %1117 = vmatpush3.xpose.msk.msra.mxu0 %vm352_vm0, %v307_v21  ;;  %p1213_p12 = pnand %p1212_p11, %p1388_p5  ;;  %p1220_p2 = por %p1219_p1, %p1218_p0 }
  0x2e   : > { %1118 = vmatprep.subr.msk.mxu0 %vm352_vm0, %v322_v22 }
  0x2f   : > { %p1214_p13 = pneg %p1213_p12 }
  0x31   : > { %1119 = vmatpush3.xpose.msk.msra.mxu0 %vm352_vm0, %v306_v23  ;;  %p1221_p3 = pnand %p1220_p2, %p1214_p13 }
  0x32   : > { %1120 = vmatprep.subr.msk.mxu0 %vm352_vm0, %v321_v24 }
  0x35   : > { %1121 = vmatpush3.xpose.msk.msra.mxu0 %vm352_vm0, %v305_v25 }
  0x36   : > { %1122 = vmatprep.subr.msk.mxu0 %vm352_vm0, %v320_v26 }
  0x39   : > { %1123 = vmatpush3.xpose.msk.msra.mxu0 %vm352_vm0, %v304_v27 }
  0x3a   : > { %1124 = vmatprep.subr.msk.mxu0 %vm352_vm0, %v319_v28 }
  0x3d   : > { %1125 = vmatpush3.xpose.msk.msra.mxu0 %vm352_vm0, %v303_v29 }
  0x3e   : > { %1126 = vmatprep.subr.msk.mxu0 %vm352_vm0, %v318_v30 }
  0x41   : > { %1127 = vmatpush3.xpose.msk.msra.mxu0 %vm352_vm0, %v302_v31 }
  0x42   : > { %1128 = vmatprep.subr.msk.mxu0 %vm352_vm0, %v317_v32 }
  0x45   : > { %1129 = vmatpush3.xpose.msk.msra.mxu0 %vm352_vm0, %v301_v33 }
  0x46   : > { %1130 = vmatprep.subr.msk.mxu0 %vm352_vm0, %v316_v34 }
  0x49   : > { %1131 = vmatpush3.xpose.msk.msra.mxu0 %vm352_vm0, %v300_v35 }
  0x4a   : > { %1132 = vmatprep.subr.msk.mxu0 %vm352_vm0, %v315_v36 }
  0x4d   : > { %1133 = vmatpush3.xpose.msk.msra.mxu0 %vm352_vm0, %v299_v37 }
  0x4e   : > { %1134 = vmatprep.subr.msk.mxu0 %vm352_vm0, %v314_v38 }
  0x51   : > { %1135 = vmatpush3.xpose.msk.msra.mxu0 %vm352_vm0, %v298_v39 }
  0x52   : > { %1136 = vmatprep.subr.msk.mxu0 %vm352_vm0, %v313_v40 }
  0x55   : > { %1137 = vmatpush3.xpose.msk.msra.mxu0 %vm352_vm0, %v297_v41 }
  0x56   : > { %1138 = vmatprep.subr.msk.mxu0 %vm352_vm0, %v312_v42 }
  0x59   : > { %1139 = vmatpush3.xpose.msk.msra.mxu0 %vm352_vm0, %v296_v43 }
  0x5c   : > { %1141 = vmatmul.mubr.msk.f32.vlgmr.msra.gmra.mxu0 %vm352_vm0, %v1402_v0 }
  0x5d   : > { %1142 = vmatprep.mubr.msk.f32.mxu0 %vm352_vm0, %v293_v44 }
  0x60   : > { %1143 = vmatmul.mubr.msk.f32.gmra.mxu0 %vm352_vm0, %v293_v44  ;;  %v695_v44 = vld [vmem:[%s1638_s3] sm:$0xff] }
  0x61   : > { %1144 = vmatprep.mubr.msk.f32.mxu0 %vm352_vm0, %v294_v45 }
  0x64   : > { %1145 = vmatmul.mubr.msk.f32.gmra.mxu0 %vm352_vm0, %v294_v45  ;;  %v696_v45 = vld [vmem:[%s1638_s3 + $0x8] sm:$0xff] }
  0x65   : > { %1146 = vmatprep.mubr.msk.f32.mxu0 %vm352_vm0, %v295_v46 }
  0x68   : > { %1147 = vmatmul.mubr.msk.f32.gmra.mxu0 %vm352_vm0, %v295_v46 }
  0x95   : > { %v340_v55 = vpop.permute.xlu1 %339 }
  0x96   : > { %v350_v52 = vpop.permute.xlu0 %349 }
  0x99   : > { %v335_v63 = vpop.permute.xlu1 %334 }
  0x9a   : > { %v345_v57 = vpop.permute.xlu0 %344 }
  0x9d   : > { %v579_v23 = vpop.permute.xlu1 %578 }
  0x9e   : > { %v584_v21 = vpop.permute.xlu0 %583 }
  0xa1   : > { %v569_v33 = vpop.permute.xlu1 %568 }
  0xa2   : > { %v574_v29 = vpop.permute.xlu0 %573 }
 0x11c   : > { %v527_v48 = vpop.f32.mrf.mxu0 }
 0x11d   : > { %v528_v6 = vadd.f32 %v527_v48, %v335_v63 }
 0x11e   : > { %v529_v49 = vpop.f32.mrf.mxu0 }
 0x11f   : > { %v530_v4 = vadd.f32 %v529_v49, %v335_v63  ;;  %v550_v11 = vmax.f32 %v528_v6, 0.0  ;;  %v702_v49 = vpop.permute.xlu0 %701 }
 0x120   : > { %v533_v50 = vpop.f32.mrf.mxu0 }
 0x121   : > { %v534_v2 = vadd.f32 %v533_v50, %v340_v55  ;;  %v551_v10 = vmax.f32 %v530_v4, 0.0  ;;  %v707_v50 = vpop.permute.xlu1 %706 }
 0x122   : > { %v535_v51 = vpop.f32.mrf.mxu0 }
 0x123   : > { %v536_v0 = vadd.f32 %v535_v51, %v340_v55  ;;  %v552_v9 = vmax.f32 %v534_v2, 0.0 }
 0x124   : > { %v539_v53 = vpop.f32.mrf.mxu0 }
 0x125   : > { %v540_v62 = vadd.f32 %v539_v53, %v345_v57  ;;  %v553_v8 = vmax.f32 %v536_v0, 0.0 }
 0x126   : > { %v541_v54 = vpop.f32.mrf.mxu0 }
 0x127   : > { %v542_v60 = vadd.f32 %v541_v54, %v345_v57  ;;  %v554_v7 = vmax.f32 %v540_v62, 0.0 }
 0x128   : > { %v545_v56 = vpop.f32.mrf.mxu0 }
 0x129   : > { %v546_v58 = vadd.f32 %v545_v56, %v350_v52  ;;  %v555_v5 = vmax.f32 %v542_v60, 0.0 }
 0x12a   : > { %v547_v59 = vpop.f32.mrf.mxu0 }
 0x12b   : > { %v548_v61 = vadd.f32 %v547_v59, %v350_v52  ;;  %v556_v3 = vmax.f32 %v546_v58, 0.0 }
 0x12d   : > { %v557_v1 = vmax.f32 %v548_v61, 0.0 }
 0x12f   : > { %622 = vmatprep.subr.mxu1 %v557_v1 }
 0x130   : > { %623 = vmatpush1.msra.mxu1 %v556_v3 }
 0x131   : > { %624 = vmatprep.subr.mxu1 %v555_v5 }
 0x132   : > { %625 = vmatpush1.msra.mxu1 %v554_v7 }
 0x133   : > { %626 = vmatprep.subr.mxu1 %v553_v8 }
 0x134   : > { %627 = vmatpush1.msra.mxu1 %v552_v9 }
 0x135   : > { %628 = vmatprep.subr.mxu1 %v551_v10 }
 0x136   : > { %629 = vmatpush1.msra.mxu1 %v550_v11 }
 0x137   : > { %1091 = vmatmul.mubr.msk.f32.vlgmr.msra.gmra.mxu1 %vm352_vm0, %v558_v12 }
 0x138   : > { %668 = vmatprep.mubr.f32.mxu1 %v1304_v47 }
 0x13b   : > { %1092 = vmatmul.mubr.msk.f32.gmra.mxu1 %vm352_vm0, %v559_v13 }
 0x13c   : > { %674 = vmatprep.mubr.f32.mxu1 %v1304_v47 }
 0x13f   : > { %1093 = vmatmul.mubr.msk.f32.gmra.mxu1 %vm352_vm0, %v560_v14 }
 0x140   : > { %680 = vmatprep.mubr.f32.mxu1 %v1304_v47 }
 0x143   : > { %1094 = vmatmul.mubr.msk.f32.gmra.mxu1 %vm352_vm0, %v561_v15 }
 0x144   : > { %779 = vmatprep.mubr.f32.mxu1 %v1304_v47 }
 0x1f7   : > { %v664_v16 = vpop.f32.mrf.mxu1 }
 0x1f8   : > { %v665_v38 = vadd.f32 %v664_v16, %v569_v33 }
 0x1f9   : > { %v666_v17 = vpop.f32.mrf.mxu1 }
 0x1fa   : > { %v667_v36 = vadd.f32 %v666_v17, %v569_v33  ;;  %v687_v43 = vmax.f32 %v665_v38, 0.0  ;;  %v842_v38 = vld [vmem:[%s1640_s5] sm:$0xff] }
 0x1fb   : > { %v670_v18 = vpop.f32.mrf.mxu1 }
 0x1fc   : > { %v671_v34 = vadd.f32 %v670_v18, %v574_v29  ;;  %v688_v42 = vmax.f32 %v667_v36, 0.0 }
 0x1fd   : > { %v672_v19 = vpop.f32.mrf.mxu1 }
 0x1fe   : > { %v673_v31 = vadd.f32 %v672_v19, %v574_v29  ;;  %v689_v41 = vmax.f32 %v671_v34, 0.0 }
 0x1ff   : > { %v676_v20 = vpop.f32.mrf.mxu1 }
 0x200   : > { %v677_v30 = vadd.f32 %v676_v20, %v579_v23  ;;  %v690_v40 = vmax.f32 %v673_v31, 0.0 }
 0x201   : > { %v678_v22 = vpop.f32.mrf.mxu1 }
 0x202   : > { %v679_v27 = vadd.f32 %v678_v22, %v579_v23  ;;  %v691_v39 = vmax.f32 %v677_v30, 0.0 }
 0x203   : > { %v682_v24 = vpop.f32.mrf.mxu1 }
 0x204   : > { %v683_v25 = vadd.f32 %v682_v24, %v584_v21  ;;  %v692_v37 = vmax.f32 %v679_v27, 0.0 }
 0x205   : > { %v684_v26 = vpop.f32.mrf.mxu1 }
 0x206   : > { %v685_v28 = vadd.f32 %v684_v26, %v584_v21  ;;  %v693_v35 = vmax.f32 %v683_v25, 0.0 }
 0x208   : > { %v694_v32 = vmax.f32 %v685_v28, 0.0 }
 0x20a   : > { %739 = vmatprep.subr.mxu1 %v694_v32 }
 0x20b   : > { %740 = vmatpush1.msra.mxu1 %v693_v35 }
 0x20c   : > { %741 = vmatprep.subr.mxu1 %v692_v37 }
 0x20d   : > { %742 = vmatpush1.msra.mxu1 %v691_v39 }
 0x20e   : > { %743 = vmatprep.subr.mxu1 %v690_v40 }
 0x20f   : > { %744 = vmatpush1.msra.mxu1 %v689_v41 }
 0x210   : > { %745 = vmatprep.subr.mxu1 %v688_v42 }
 0x211   : > { %746 = vmatpush1.msra.mxu1 %v687_v43 }
 0x212   : > { %1095 = vmatmul.mubr.msk.f32.vlgmr.msra.gmra.mxu1 %vm352_vm0, %v695_v44 }
 0x213   : > { %785 = vmatprep.mubr.f32.mxu1 %v1304_v47 }
 0x216   : > { %1096 = vmatmul.mubr.msk.f32.gmra.mxu1 %vm352_vm0, %v696_v45 }
 0x217   : > { %911 = vmatprep.mubr.f32.mxu1 %v1304_v47 }
 0x2d2   : > { %v781_v46 = vpop.f32.mrf.mxu1 }
 0x2d3   : > { %v782_v52 = vadd.f32 %v781_v46, %v702_v49 }
 0x2d4   : > { %v783_v48 = vpop.f32.mrf.mxu1 }
 0x2d5   : > { %v784_v55 = vadd.f32 %v783_v48, %v702_v49 }
 0x2d6   : > { %v787_v51 = vpop.f32.mrf.mxu1 }
 0x2d7   : > { %v788_v53 = vadd.f32 %v787_v51, %v707_v50 }
 0x2d8   : > { %v789_v54 = vpop.f32.mrf.mxu1 }
 0x2d9   : > { %v792_v56 = vmax.f32 %v782_v52, %v788_v53  ;;  %v790_v57 = vadd.f32 %v789_v54, %v707_v50 }
 0x2db   : > { %v793_v58 = vrot.slane %v792_v56, 4  ;;  %v799_v59 = vmax.f32 %v784_v55, %v790_v57 }
 0x2dd   : > { %v794_v60 = vmax.f32 %v792_v56, %v793_v58  ;;  %v800_v61 = vrot.slane %v799_v59, 4 }
 0x2df   : > { %v795_v62 = vrot.slane %v794_v60, 2  ;;  %v801_v63 = vmax.f32 %v799_v59, %v800_v61 }
 0x2e1   : > { %v796_v0 = vmax.f32 %v794_v60, %v795_v62  ;;  %v802_v1 = vrot.slane %v801_v63, 2 }
 0x2e3   : > { %v797_v47 = vrot.slane %v796_v0, 1  ;;  %v803_v2 = vmax.f32 %v801_v63, %v802_v1 }
 0x2e5   : > { %v798_v3 = vmax.f32 %v796_v0, %v797_v47  ;;  %v804_v4 = vrot.slane %v803_v2, 1 }
 0x2e7   : > { %v806_v5 = vsub.f32 %v782_v52, %v798_v3  ;;  %v808_v6 = vsub.f32 %v788_v53, %v798_v3  ;;  %v805_v7 = vmax.f32 %v803_v2, %v804_v4 }
 0x2e9   : > { %v810_v8 = vmul.f32 1.442695, %v806_v5  ;;  %v814_v9 = vmul.f32 1.442695, %v808_v6  ;;  %v807_v10 = vsub.f32 %v784_v55, %v805_v7  ;;  %v809_v11 = vsub.f32 %v790_v57, %v805_v7 }
 0x2eb   : > { %1199 = vpow2.f32 %v810_v8  ;;  %v812_v12 = vmul.f32 1.442695, %v807_v10  ;;  %v816_v13 = vmul.f32 1.442695, %v809_v11 }
 0x2ec   : > { %1201 = vpow2.f32 %v814_v9 }
 0x2ed   : > { %1203 = vpow2.f32 %v812_v12 }
 0x2ee   : > { %1205 = vpow2.f32 %v816_v13 }
 0x2f8   : > { %v1200_v14 = vpop.eup %1199 }
 0x2f9   : > { %v1202_v15 = vpop.eup %1201 }
 0x2fa   : > { %v1204_v16 = vpop.eup %1203  ;;  %v818_v17 = vadd.f32 %v1202_v15, %v1200_v14 }
 0x2fb   : > { %v1206_v18 = vpop.eup %1205 }
 0x2fc   : > { %v819_v19 = vrot.slane %v818_v17, 4  ;;  %v825_v20 = vadd.f32 %v1206_v18, %v1204_v16 }
 0x2fe   : > { %v820_v21 = vadd.f32 %v819_v19, %v818_v17  ;;  %v826_v22 = vrot.slane %v825_v20, 4 }
 0x300   : > { %v821_v23 = vrot.slane %v820_v21, 2  ;;  %v827_v24 = vadd.f32 %v826_v22, %v825_v20 }
 0x302   : > { %v822_v25 = vadd.f32 %v821_v23, %v820_v21  ;;  %v828_v26 = vrot.slane %v827_v24, 2 }
 0x304   : > { %v823_v27 = vrot.slane %v822_v25, 1  ;;  %v829_v28 = vadd.f32 %v828_v26, %v827_v24 }
 0x306   : > { %v830_v29 = vrot.slane %v829_v28, 1  ;;  %v824_v30 = vadd.f32 %v823_v27, %v822_v25 }
 0x308   : > { %v831_v31 = vadd.f32 %v830_v29, %v829_v28  ;;  %1207 = vrcp.f32 %v824_v30 }
 0x30a   : > { %1209 = vrcp.f32 %v831_v31 }
 0x315   : > { %v1208_v32 = vpop.eup %1207 }
 0x316   : > { %v836_v33 = vmul.f32 %v1208_v32, %v1202_v15  ;;  %v833_v34 = vmul.f32 %v1208_v32, %v1200_v14 }
 0x317   : > { %v1210_v35 = vpop.eup %1209 }
 0x318   : > { %v837_v36 = vmul.f32 %v1210_v35, %v1206_v18  ;;  %840 = vst [vmem:[%s276_s18 + $0x10] sm:$0xff] %v836_v33  ;;  %v835_v37 = vmul.f32 %v1210_v35, %v1204_v16  ;;  %838 = vst [vmem:[%s276_s18] sm:$0xff] %v833_v34 }
 0x31a   : > { %841 = vst [vmem:[%s276_s18 + $0x18] sm:$0xff] %v837_v36  ;;  %875 = vmatprep.subr.mxu1 %v837_v36  ;;  %839 = vst [vmem:[%s276_s18 + $0x8] sm:$0xff] %v835_v37 }
 0x31b   : > { %876 = vmatpush1.msra.mxu1 %v836_v33 }
 0x31c   : > { %877 = vmatprep.subr.mxu1 %v835_v37 }
 0x31d   : > { %878 = vmatpush1.msra.mxu1 %v833_v34 }
 0x31e   : > { %1097 = vmatmul.mubr.msk.f32.vlgmr.msra.gmra.mxu1 %vm843_vm1, %v842_v38 }
 0x31f   : > { %1224 = shalt.err (!%p1221_p3)
}
 0x320   : > { %s1225_s18 = scalar_lea.hbm %s1568_s8, 512  ;;  %s1229_s23 = scalar_lea.hbm %s1641_s6, 1024 }
 0x321   : > { %p1226_p4 = scmp.ne.s32.totalorder %s1568_s8, %s1225_s18  ;;  %p1230_p9 = scmp.lt.s32.totalorder %s1568_s8, %s1641_s6 }
 0x322   : > { %p1231_p10 = scmp.lt.s32.totalorder %s1229_s23, %s1225_s18 }
 0x323   : > { %p1227_p7 = pnand %p1226_p4, %p1388_p5 }
 0x324   : > { %p1232_p11 = por %p1231_p10, %p1230_p9 }
 0x325   : > { %p1228_p8 = pneg %p1227_p7 }
 0x327   : > { %p1233_p12 = pnand %p1232_p11, %p1228_p8 }
 0x329   : > { %1236 = shalt.err (!%p1233_p12)
}
 0x32a   : > { %s1306_s15 = smov 256   ;;  %s1307_s13 = smov 512  }
 0x32b   : > { %s1308_s17 = smov 16   ;;  %s1052_s19 = sshll.u32 %s1554_s14, 4 }
 0x32c   : > { %1148 = dma.vmem_to_hbm [thread:$0]  (%p1388_p5), %s1560_s21, 512, %s1568_s8, %s921_s9, %s1306_s15, %s1307_s13, %s1308_s17  }
 0x32d   : > { %s283_s20 = scalar_lea.vmem [#allocation4], %s1052_s19  ;;  %s954_s16 = scalar_lea.hbm %s1642_s7, %s1106_s22 }
 0x32e   : > { %s956_s18 = sshll.u32 %s283_s20, 4  ;;  %s926_s0 = scalar_lea.sflag [#allocation5], %s1554_s14  ;;  %s1594_s18 = int_to_ptr.vmem [resolvable:$true] %s956_s18 }
 0x32f   : > { %s1237_s1 = scalar_lea.vmem %s1594_s18, 256  ;;  %s1309_s21 = smov [#allocation4]  }
 0x330   : > { %p1238_p13 = scmp.ne.s32.totalorder %s1594_s18, %s1237_s1  ;;  %s1241_s8 = sshll.u32 %s1309_s21, 4  ;;  %s1242_s8 = int_to_ptr.vmem [resolvable:$false] %s1241_s8 }
 0x331   : > { %s1243_s9 = scalar_lea.vmem %s1242_s8, 512  ;;  %p1244_p2 = scmp.lt.s32.totalorder %s1594_s18, %s1242_s8 }
 0x332   : > { %p1239_p0 = pnand %p1238_p13, %p1388_p5  ;;  %p1245_p3 = scmp.lt.s32.totalorder %s1243_s9, %s1237_s1 }
 0x334   : > { %p1240_p1 = pneg %p1239_p0  ;;  %p1246_p4 = por %p1245_p3, %p1244_p2 }
 0x336   : > { %p1247_p7 = pnand %p1246_p4, %p1240_p1 }
 0x3de   : > { %v913_v39 = vpop.f32.mrf.mxu1 }
 0x3df   : > { %918 = vst [vmem:[%s283_s20] sm:$0xff] %v913_v39 }
 0x3e0   : > { %v915_v40 = vpop.f32.mrf.mxu1 }
 0x3e1   : > { %919 = vst [vmem:[%s283_s20 + $0x8] sm:$0xff] %v915_v40 }
 0x3e2   : > { %1250 = shalt.err (!%p1247_p7)
}
 0x3e3   : > { %s1251_s28 = scalar_lea.hbm %s954_s16, 256  ;;  %s1255_s15 = scalar_lea.hbm %s1642_s7, 512 }
 0x3e4   : > { %p1252_p8 = scmp.ne.s32.totalorder %s954_s16, %s1251_s28  ;;  %p1256_p11 = scmp.lt.s32.totalorder %s954_s16, %s1642_s7 }
 0x3e5   : > { %p1257_p12 = scmp.lt.s32.totalorder %s1255_s15, %s1251_s28 }
 0x3e6   : > { %p1253_p9 = pnand %p1252_p8, %p1388_p5 }
 0x3e7   : > { %p1258_p13 = por %p1257_p12, %p1256_p11 }
 0x3e8   : > { %p1254_p10 = pneg %p1253_p9 }
 0x3ea   : > { %p1259_p0 = pnand %p1258_p13, %p1254_p10 }
 0x3ec   : > { %1262 = shalt.err (!%p1259_p0)
}
 0x3ed   : > { %1149 = dma.vmem_to_hbm [thread:$0]  (%p1388_p5), %s1594_s18, 256, %s954_s16, %s926_s0  }
 0x3ee PF: > { %p1159_p1 = scmp.ge.s32.totalorder %s1301_s27, 2  ;;  %s968_s1 = sand.u32 1, %s1289_s24  }
 0x3ef   : > { %s969_s19 = scalar_lea.sflag [#allocation3], %s968_s1 }
 0x3f0   : > { %p1153_p2 = pnand %p1159_p1, %p1392_p6 }
 0x3f2   : > { %p1154_p3 = pneg %p1153_p2 }
 0x3f4   : > { %1280 = dma.done.wait (%p1154_p3), %s969_s19, 512  }
 0x3f5   : > { %1282 = vsyncadd (%p1154_p3), %s969_s19, 4294966784  ;;  %s978_s20 = scalar_lea.sflag [#allocation5], %s968_s1 }
 0x3f6   : > { %1284 = dma.done.wait (%p1154_p3), %s978_s20, 256  }
 0x3f7   : > { %1286 = vsyncadd (%p1154_p3), %s978_s20, 4294967040  ;;  %p21_p5 = scmp.ge.s32.totalorder %s1375_s30, 4   ;;  %s1649_s24 = smov %s1293_s25 }
 0x3f8   : > { %s1650_s25 = smov %s1297_s26  ;;  %s1651_s26 = smov %s1386_s10 }
 0x3f9   : > { %s1652_s27 = smov %s1375_s30  ;;  %23 = sbr.rel (!%p21_p5) target bundleno = 8 (0x8), region = 96 }
 0x3fe   :  { %983 = vsyncpa [#allocation3], 1 }
 0x3ff   :  { %985 = vsyncpa [#allocation3 + $0x1], 1 }
 0x400   :  { %986 = vsyncpa [#allocation5], 1 }
 0x401   :  { %988 = vsyncpa [#allocation5 + $0x1], 1 }

</bundles_post_ra>
